<compile_context>
chip_gen: v7x
topology: tpu7x:2x2x1
jax: 0.10.0
libtpu: 0.0.40
codegen_flags: <defaults>
</compile_context>

<pallas_src>
import functools

import jax
import jax.numpy as jnp
from jax import lax
from jax.experimental import pallas as pl
from jax.experimental.pallas import tpu as pltpu


# --------------------------------------------------------------------------
# Kernels
# --------------------------------------------------------------------------

def _bn_fused_kernel(x_ref, gamma_ref, beta_ref, rmean_ref, rvar_ref,
                     out_ref, new_rmean_ref, new_rvar_ref, *, eps, momentum, n):
    """Fused stats + normalize for one feature tile (full batch resident)."""
    x = x_ref[...].astype(jnp.float32)                 # (N, TF)

    # Pivot-centered sums: avoids catastrophic cancellation in E[x^2]-E[x]^2.
    pivot = x[0:1, :]                                   # (1, TF)
    centered = x - pivot                                # (N, TF)

    # Batch reduction on the MXU (ones-row matmul, f32 accumulation); the
    # kernel is mem-bound so unit choice is free, and this keeps the VPU idle.
    ones_row = jnp.ones((1, centered.shape[0]), dtype=jnp.float32)
    s1 = jnp.dot(ones_row, centered, preferred_element_type=jnp.float32)
    s2 = jnp.dot(ones_row, centered * centered, preferred_element_type=jnp.float32)

    inv_n = jnp.float32(1.0 / n)
    mean_c = s1 * inv_n
    var = jnp.maximum(s2 * inv_n - mean_c * mean_c, 0.0)   # biased variance
    mean = pivot + mean_c
    inv_std = lax.rsqrt(var + eps)                      # EUP rsqrt, free slot

    # Fold normalize + affine into one broadcast FMA over the (N, TF) tile.
    gamma = gamma_ref[...].astype(jnp.float32)
    beta = beta_ref[...].astype(jnp.float32)
    scale = gamma * inv_std                             # (1, TF)
    shift = beta - mean_c * scale                       # (1, TF)
    out_ref[...] = (centered * scale + shift).astype(out_ref.dtype)

    # Running-statistics update (tiny (1, TF) rows).
    rm = rmean_ref[...].astype(jnp.float32)
    rv = rvar_ref[...].astype(jnp.float32)
    new_rmean_ref[...] = ((1.0 - momentum) * rm + momentum * mean).astype(new_rmean_ref.dtype)
    new_rvar_ref[...] = ((1.0 - momentum) * rv + momentum * var).astype(new_rvar_ref.dtype)


def _bn_stats_kernel(x_ref, rmean_ref, rvar_ref,
                     mean_ref, var_ref, new_rmean_ref, new_rvar_ref,
                     s1_ref, s2_ref, piv_ref, *, momentum, n):
    """Pass 1 of the large-N path: accumulate per-feature sums over batch tiles."""
    b = pl.program_id(1)
    x = x_ref[...].astype(jnp.float32)                  # (TB, TF)

    @pl.when(b == 0)
    def _():
        piv_ref[...] = x[0:1, :]                        # global row 0: always valid
        s1_ref[...] = jnp.zeros_like(s1_ref)
        s2_ref[...] = jnp.zeros_like(s2_ref)

    pivot = piv_ref[...]
    # Mask rows past the end of the batch (ragged last batch tile).
    row = lax.broadcasted_iota(jnp.int32, x.shape, 0) + b * x.shape[0]
    centered = jnp.where(row < n, x - pivot, 0.0)

    ones_row = jnp.ones((1, centered.shape[0]), dtype=jnp.float32)
    s1_ref[...] += jnp.dot(ones_row, centered, preferred_element_type=jnp.float32)
    s2_ref[...] += jnp.dot(ones_row, centered * centered, preferred_element_type=jnp.float32)

    @pl.when(b == pl.num_programs(1) - 1)
    def _():
        inv_n = jnp.float32(1.0 / n)
        mean_c = s1_ref[...] * inv_n
        var = jnp.maximum(s2_ref[...] * inv_n - mean_c * mean_c, 0.0)
        mean = piv_ref[...] + mean_c
        mean_ref[...] = mean
        var_ref[...] = var
        rm = rmean_ref[...].astype(jnp.float32)
        rv = rvar_ref[...].astype(jnp.float32)
        new_rmean_ref[...] = ((1.0 - momentum) * rm + momentum * mean).astype(new_rmean_ref.dtype)
        new_rvar_ref[...] = ((1.0 - momentum) * rv + momentum * var).astype(new_rvar_ref.dtype)


def _bn_norm_kernel(x_ref, gamma_ref, beta_ref, mean_ref, var_ref, out_ref, *, eps):
    """Normalize one (TB, TF) tile with precomputed per-feature mean/var."""
    x = x_ref[...].astype(jnp.float32)
    inv_std = lax.rsqrt(var_ref[...].astype(jnp.float32) + eps)
    scale = gamma_ref[...].astype(jnp.float32) * inv_std
    shift = beta_ref[...].astype(jnp.float32) - mean_ref[...].astype(jnp.float32) * scale
    out_ref[...] = (x * scale + shift).astype(out_ref.dtype)


# --------------------------------------------------------------------------
# Tiling / VMEM budgeting
# --------------------------------------------------------------------------

def _vmem_budget():
    """(vmem_limit_bytes, per-step tile budget) tuned per TPU generation."""
    cap = 64 << 20                       # conservative default = v7x per-TC VMEM
    try:
        info = pltpu.get_tpu_info()
        cap = int(getattr(info, "vmem_capacity_bytes", cap)) or cap
    except Exception:
        pass
    # v5e/v6e (128 MiB physical) -> 64 MiB scoped limit; v7x (64 MiB) -> 32 MiB.
    limit = max(24 << 20, min(cap // 2, 80 << 20))
    budget = max(16 << 20, limit - (8 << 20))   # headroom for Mosaic scratch
    return limit, budget


def _fused_tile_bytes(n, tf, x_isz, out_isz):
    # Double-buffered x/out pipeline buffers + ~3 full-tile f32 temporaries
    # (f32 cast of x, pivot-centered copy, centered**2 MXU operand).
    return n * tf * (2 * x_isz + 2 * out_isz + 3 * 4)


def _choose_fused_feature_tile(n, f, x_isz, out_isz, budget):
    """Feature tile for the fused path, or None if even TF=128 does not fit."""
    if f <= 128:
        tf = f                                   # full-dim (exact) lane block
        return tf if _fused_tile_bytes(n, tf, x_isz, out_isz) <= budget else None
    tf = None
    for cand in (1024, 512, 256, 128):
        if _fused_tile_bytes(n, cand, x_isz, out_isz) <= budget:
            tf = cand
            break
    if tf is None:
        return None
    # v7x megacore: prefer >= 2 feature tiles so both TensorCores get work
    # under dimension_semantics=("parallel",).  Floor at 256 so single-TC
    # chips (v5e/v6e) pay at most one halving for it.
    while tf > 256 and pl.cdiv(f, tf) < 2:
        tf //= 2
    # Keep the block within the array lane extent (only the last tile is ragged).
    while tf > 128 and tf > f:
        tf //= 2
    return tf


def _feature_tile_2d(f):
    """Lane-dense feature tile for the tiled-batch (two-pass / eval) kernels."""
    if f < 128:
        return f
    if f >= 512:
        return 512
    if f >= 256:
        return 256
    return 128


def _batch_tile(n, tf, per_elem_bytes, budget):
    """Largest multiple-of-8 batch tile (<= n) whose per-step footprint fits."""
    if n <= 8:
        return n
    cap = (n // 8) * 8
    for cand in (2048, 1024, 512, 256, 128, 64, 32, 16, 8):
        if cand <= cap and cand * tf * per_elem_bytes <= budget:
            return cand
    return 8


# --------------------------------------------------------------------------
# Wrapper
# --------------------------------------------------------------------------

def batchnorm_forward(x, gamma, beta, running_mean, running_var,
                      eps=1e-5, momentum=0.1, *, training=True, two_pass=None):
    """BatchNorm forward matching the reference module.

    Training mode returns (output, new_running_mean, new_running_var); the
    running stats are updated with the biased batch variance (module
    convention).  Eval mode normalizes with the provided running statistics
    and returns them unchanged.
    """
    n, f = x.shape
    out_dtype = x.dtype
    x_isz = jnp.dtype(x.dtype).itemsize
    out_isz = jnp.dtype(out_dtype).itemsize

    vmem_limit, budget = _vmem_budget()

    gamma2 = gamma.reshape(1, f)
    beta2 = beta.reshape(1, f)
    rmean2 = running_mean.reshape(1, f)
    rvar2 = running_var.reshape(1, f)

    # ---- Eval mode: normalize with running statistics, no state update. ----
    if not training:
        tf = _feature_tile_2d(f)
        per_elem = 2 * x_isz + 2 * out_isz + 3 * 4
        tb = _batch_tile(n, tf, per_elem, budget)
        nf, nb = pl.cdiv(f, tf), pl.cdiv(n, tb)
        tile2 = pl.BlockSpec((tb, tf), lambda j, b: (b, j))
        row2 = pl.BlockSpec((1, tf), lambda j, b: (0, j))
        out = pl.pallas_call(
            functools.partial(_bn_norm_kernel, eps=eps),
            grid=(nf, nb),
            in_specs=[tile2, row2, row2, row2, row2],
            out_specs=tile2,
            out_shape=jax.ShapeDtypeStruct((n, f), out_dtype),
            compiler_params=pltpu.CompilerParams(
                dimension_semantics=("parallel", "parallel"),
                vmem_limit_bytes=vmem_limit),
        )(x, gamma2, beta2, rmean2, rvar2)
        return out, running_mean, running_var

    # ---- Training mode. ----
    tf_fused = _choose_fused_feature_tile(n, f, x_isz, out_isz, budget)
    use_fused = (tf_fused is not None) if two_pass is None else (not two_pass)

    if use_fused:
        tf = tf_fused if tf_fused is not None else (f if f <= 128 else 128)
        grid = (pl.cdiv(f, tf),)
        x_spec = pl.BlockSpec((n, tf), lambda j: (0, j))   # full batch, one feature tile
        row_spec = pl.BlockSpec((1, tf), lambda j: (0, j))
        out, new_rm, new_rv = pl.pallas_call(
            functools.partial(_bn_fused_kernel, eps=eps, momentum=momentum, n=n),
            grid=grid,
            in_specs=[x_spec, row_spec, row_spec, row_spec, row_spec],
            out_specs=(x_spec, row_spec, row_spec),
            out_shape=(
                jax.ShapeDtypeStruct((n, f), out_dtype),
                jax.ShapeDtypeStruct((1, f), running_mean.dtype),
                jax.ShapeDtypeStruct((1, f), running_var.dtype),
            ),
            compiler_params=pltpu.CompilerParams(
                dimension_semantics=("parallel",),
                vmem_limit_bytes=vmem_limit),
        )(x, gamma2, beta2, rmean2, rvar2)
        return out, new_rm[0], new_rv[0]

    # ---- Large-N fallback: two-pass (stats over batch tiles, then normalize). ----
    tf = _feature_tile_2d(f)
    per_elem = 2 * x_isz + 2 * out_isz + 3 * 4
    tb = _batch_tile(n, tf, per_elem, budget)
    nf, nb = pl.cdiv(f, tf), pl.cdiv(n, tb)
    tile2 = pl.BlockSpec((tb, tf), lambda j, b: (b, j))
    row2 = pl.BlockSpec((1, tf), lambda j, b: (0, j))

    mean, var, new_rm, new_rv = pl.pallas_call(
        functools.partial(_bn_stats_kernel, momentum=momentum, n=n),
        grid=(nf, nb),                               # reduction (batch) axis last
        in_specs=[tile2, row2, row2],
        out_specs=(row2, row2, row2, row2),
        out_shape=(
            jax.ShapeDtypeStruct((1, f), jnp.float32),
            jax.ShapeDtypeStruct((1, f), jnp.float32),
            jax.ShapeDtypeStruct((1, f), running_mean.dtype),
            jax.ShapeDtypeStruct((1, f), running_var.dtype),
        ),
        scratch_shapes=[
            pltpu.VMEM((1, tf), jnp.float32),        # s1 accumulator
            pltpu.VMEM((1, tf), jnp.float32),        # s2 accumulator
            pltpu.VMEM((1, tf), jnp.float32),        # pivot row
        ],
        compiler_params=pltpu.CompilerParams(
            dimension_semantics=("parallel", "arbitrary"),
            vmem_limit_bytes=vmem_limit),
    )(x, rmean2, rvar2)

    out = pl.pallas_call(
        functools.partial(_bn_norm_kernel, eps=eps),
        grid=(nf, nb),
        in_specs=[tile2, row2, row2, row2, row2],
        out_specs=tile2,
        out_shape=jax.ShapeDtypeStruct((n, f), out_dtype),
        compiler_params=pltpu.CompilerParams(
            dimension_semantics=("parallel", "parallel"),
            vmem_limit_bytes=vmem_limit),
    )(x, gamma2, beta2, mean, var)

    return out, new_rm[0], new_rv[0]


# --------------------------------------------------------------------------
# Demo / self-test
# --------------------------------------------------------------------------

if __name__ == "__main__":
    key = jax.random.PRNGKey(0)
    k1, k2, k3, k4, k5, k6 = jax.random.split(key, 6)
    eps, momentum = 1e-5, 0.1

    # --- Case 1: module-like shapes, fused single-kernel training path. -----
    num_features, batch = 32, 8
    x = 1.5 * jax.random.normal(k1, (batch, num_features), dtype=jnp.float32) + 2.0
    gamma = jnp.ones((num_features,), jnp.float32)           # module __init__
    beta = jnp.zeros((num_features,), jnp.float32)
    running_mean = jnp.zeros((num_features,), jnp.float32)
    running_var = jnp.ones((num_features,), jnp.float32)

    out, new_rm, new_rv = batchnorm_forward(x, gamma, beta, running_mean,
                                            running_var, eps, momentum)
    jax.block_until_ready((out, new_rm, new_rv))

    mean = jnp.mean(x, axis=0)
    var = jnp.mean((x - mean) ** 2, axis=0)                  # unbiased=False
    ref_out = gamma * (x - mean) / jnp.sqrt(var + eps) + beta
    ref_rm = (1 - momentum) * running_mean + momentum * mean
    ref_rv = (1 - momentum) * running_var + momentum * var
    assert out.shape == (batch, num_features)
    assert jnp.allclose(out, ref_out, atol=1e-4, rtol=1e-4), "fused output mismatch"
    assert jnp.allclose(new_rm, ref_rm, atol=1e-5, rtol=1e-5), "fused running_mean mismatch"
    assert jnp.allclose(new_rv, ref_rv, atol=1e-5, rtol=1e-5), "fused running_var mismatch"

    # --- Case 2: eval-mode path. --------------------------------------------
    out_eval, _, _ = batchnorm_forward(x, gamma, beta, running_mean, running_var,
                                       eps, momentum, training=False)
    jax.block_until_ready(out_eval)
    ref_eval = gamma * (x - running_mean) / jnp.sqrt(running_var + eps) + beta
    assert jnp.allclose(out_eval, ref_eval, atol=1e-4, rtol=1e-4), "eval output mismatch"

    # --- Case 3: two-pass large-N fallback (forced), ragged N and F tails. ---
    n2, f2 = 200, 200      # not multiples of 8/128: exercises masked tail tiles
    x2 = 0.7 * jax.random.normal(k2, (n2, f2), dtype=jnp.float32) - 1.0
    g2 = 1.0 + 0.1 * jax.random.normal(k3, (f2,), dtype=jnp.float32)
    b2 = 0.1 * jax.random.normal(k4, (f2,), dtype=jnp.float32)
    rm2 = 0.1 * jax.random.normal(k5, (f2,), dtype=jnp.float32)
    rv2 = jnp.abs(jax.random.normal(k6, (f2,), dtype=jnp.float32)) + 0.5

    out2, nrm2, nrv2 = batchnorm_forward(x2, g2, b2, rm2, rv2, eps, momentum,
                                         two_pass=True)
    jax.block_until_ready((out2, nrm2, nrv2))
    m2 = jnp.mean(x2, axis=0)
    v2 = jnp.mean((x2 - m2) ** 2, axis=0)
    ref2 = g2 * (x2 - m2) / jnp.sqrt(v2 + eps) + b2
    assert jnp.allclose(out2, ref2, atol=1e-4, rtol=1e-4), "two-pass output mismatch"
    assert jnp.allclose(nrm2, (1 - momentum) * rm2 + momentum * m2,
                        atol=1e-4, rtol=1e-4), "two-pass running_mean mismatch"
    assert jnp.allclose(nrv2, (1 - momentum) * rv2 + momentum * v2,
                        atol=1e-4, rtol=1e-4), "two-pass running_var mismatch"

    print("KERNEL_OK")
</pallas_src>

<mosaic_0001>
module attributes {stable_mosaic.version = 11 : i64} {
  func.func @_bn_fused_kernel(%arg0: i32, %arg1: memref<8x32xf32, #tpu.memory_space<vmem>>, %arg2: memref<1x32xf32, #tpu.memory_space<vmem>>, %arg3: memref<1x32xf32, #tpu.memory_space<vmem>>, %arg4: memref<1x32xf32, #tpu.memory_space<vmem>>, %arg5: memref<1x32xf32, #tpu.memory_space<vmem>>, %arg6: memref<8x32xf32, #tpu.memory_space<vmem>>, %arg7: memref<1x32xf32, #tpu.memory_space<vmem>>, %arg8: memref<1x32xf32, #tpu.memory_space<vmem>>) attributes {dimension_semantics = [#tpu.dimension_semantics<parallel>], iteration_bounds = array<i64: 1>, scalar_prefetch = 0 : i64, scratch_operands = 0 : i64, tpu.core_type = #tpu.core_type<tc>, window_params = [{transform_indices = @transform_0, window_bounds = array<i64: 8, 32>}, {transform_indices = @transform_1, window_bounds = array<i64: 1, 32>}, {transform_indices = @transform_2, window_bounds = array<i64: 1, 32>}, {transform_indices = @transform_3, window_bounds = array<i64: 1, 32>}, {transform_indices = @transform_4, window_bounds = array<i64: 1, 32>}, {transform_indices = @transform_5, window_bounds = array<i64: 8, 32>}, {transform_indices = @transform_6, window_bounds = array<i64: 1, 32>}, {transform_indices = @transform_7, window_bounds = array<i64: 1, 32>}]} {
    %c0 = arith.constant 0 : index
    %c0_0 = arith.constant 0 : index
    %0 = vector.load %arg1[%c0, %c0_0] : memref<8x32xf32, #tpu.memory_space<vmem>>, vector<8x32xf32>
    %1 = vector.extract_strided_slice %0 {offsets = [0, 0], sizes = [1, 32], strides = [1, 1]} : vector<8x32xf32> to vector<1x32xf32>
    %2 = vector.broadcast %1 : vector<1x32xf32> to vector<8x32xf32>
    %3 = arith.subf %0, %2 : vector<8x32xf32>
    %cst = arith.constant 1.000000e+00 : f32
    %4 = vector.broadcast %cst : f32 to vector<1x8xf32>
    %cst_1 = arith.constant dense<0.000000e+00> : vector<1x32xf32>
    %5 = tpu.matmul %4, %3, %cst_1 {dimension_numbers = #tpu.dot_dimension_numbers<[1], [0], [0], [1], [0, 0, 1, 1], [], []>} : vector<1x8xf32>, vector<8x32xf32>, vector<1x32xf32> -> vector<1x32xf32>
    %6 = arith.mulf %3, %3 : vector<8x32xf32>
    %cst_2 = arith.constant dense<0.000000e+00> : vector<1x32xf32>
    %7 = tpu.matmul %4, %6, %cst_2 {dimension_numbers = #tpu.dot_dimension_numbers<[1], [0], [0], [1], [0, 0, 1, 1], [], []>} : vector<1x8xf32>, vector<8x32xf32>, vector<1x32xf32> -> vector<1x32xf32>
    %cst_3 = arith.constant 1.250000e-01 : f32
    %8 = vector.broadcast %cst_3 : f32 to vector<1x32xf32>
    %9 = arith.mulf %5, %8 : vector<1x32xf32>
    %cst_4 = arith.constant 1.250000e-01 : f32
    %10 = vector.broadcast %cst_4 : f32 to vector<1x32xf32>
    %11 = arith.mulf %7, %10 : vector<1x32xf32>
    %12 = arith.mulf %9, %9 : vector<1x32xf32>
    %13 = arith.subf %11, %12 : vector<1x32xf32>
    %cst_5 = arith.constant 0.000000e+00 : f32
    %14 = vector.broadcast %cst_5 : f32 to vector<1x32xf32>
    %15 = arith.maximumf %13, %14 : vector<1x32xf32>
    %16 = arith.addf %1, %9 : vector<1x32xf32>
    %cst_6 = arith.constant 9.99999974E-6 : f32
    %17 = vector.broadcast %cst_6 : f32 to vector<1x32xf32>
    %18 = arith.addf %15, %17 : vector<1x32xf32>
    %19 = math.rsqrt %18 : vector<1x32xf32>
    %c0_7 = arith.constant 0 : index
    %c0_8 = arith.constant 0 : index
    %20 = vector.load %arg2[%c0_7, %c0_8] : memref<1x32xf32, #tpu.memory_space<vmem>>, vector<1x32xf32>
    %c0_9 = arith.constant 0 : index
    %c0_10 = arith.constant 0 : index
    %21 = vector.load %arg3[%c0_9, %c0_10] : memref<1x32xf32, #tpu.memory_space<vmem>>, vector<1x32xf32>
    %22 = arith.mulf %20, %19 : vector<1x32xf32>
    %23 = arith.mulf %9, %22 : vector<1x32xf32>
    %24 = arith.subf %21, %23 : vector<1x32xf32>
    %25 = vector.broadcast %22 : vector<1x32xf32> to vector<8x32xf32>
    %26 = arith.mulf %3, %25 : vector<8x32xf32>
    %27 = vector.broadcast %24 : vector<1x32xf32> to vector<8x32xf32>
    %28 = arith.addf %26, %27 : vector<8x32xf32>
    %c0_11 = arith.constant 0 : index
    %c0_12 = arith.constant 0 : index
    %29 = vector.load %arg6[%c0_11, %c0_12] : memref<8x32xf32, #tpu.memory_space<vmem>>, vector<8x32xf32>
    tpu.vector_store %arg6[%c0_11, %c0_12], %28 {strides = array<i32>} : memref<8x32xf32, #tpu.memory_space<vmem>>, vector<8x32xf32>,
    %c0_13 = arith.constant 0 : index
    %c0_14 = arith.constant 0 : index
    %30 = vector.load %arg4[%c0_13, %c0_14] : memref<1x32xf32, #tpu.memory_space<vmem>>, vector<1x32xf32>
    %c0_15 = arith.constant 0 : index
    %c0_16 = arith.constant 0 : index
    %31 = vector.load %arg5[%c0_15, %c0_16] : memref<1x32xf32, #tpu.memory_space<vmem>>, vector<1x32xf32>
    %cst_17 = arith.constant 0.899999976 : f32
    %32 = vector.broadcast %cst_17 : f32 to vector<1x32xf32>
    %33 = arith.mulf %32, %30 : vector<1x32xf32>
    %cst_18 = arith.constant 1.000000e-01 : f32
    %34 = vector.broadcast %cst_18 : f32 to vector<1x32xf32>
    %35 = arith.mulf %34, %16 : vector<1x32xf32>
    %36 = arith.addf %33, %35 : vector<1x32xf32>
    %c0_19 = arith.constant 0 : index
    %c0_20 = arith.constant 0 : index
    %37 = vector.load %arg7[%c0_19, %c0_20] : memref<1x32xf32, #tpu.memory_space<vmem>>, vector<1x32xf32>
    tpu.vector_store %arg7[%c0_19, %c0_20], %36 {strides = array<i32>} : memref<1x32xf32, #tpu.memory_space<vmem>>, vector<1x32xf32>,
    %cst_21 = arith.constant 0.899999976 : f32
    %38 = vector.broadcast %cst_21 : f32 to vector<1x32xf32>
    %39 = arith.mulf %38, %31 : vector<1x32xf32>
    %cst_22 = arith.constant 1.000000e-01 : f32
    %40 = vector.broadcast %cst_22 : f32 to vector<1x32xf32>
    %41 = arith.mulf %40, %15 : vector<1x32xf32>
    %42 = arith.addf %39, %41 : vector<1x32xf32>
    %c0_23 = arith.constant 0 : index
    %c0_24 = arith.constant 0 : index
    %43 = vector.load %arg8[%c0_23, %c0_24] : memref<1x32xf32, #tpu.memory_space<vmem>>, vector<1x32xf32>
    tpu.vector_store %arg8[%c0_23, %c0_24], %42 {strides = array<i32>} : memref<1x32xf32, #tpu.memory_space<vmem>>, vector<1x32xf32>,
    return
  }
  func.func @transform_0(%arg0: i32) -> (i32, i32) {
    %c0_i32 = arith.constant 0 : i32
    %c0_i32_0 = arith.constant 0 : i32
    return %c0_i32, %arg0 : i32, i32
  }
  func.func @transform_1(%arg0: i32) -> (i32, i32) {
    %c0_i32 = arith.constant 0 : i32
    %c0_i32_0 = arith.constant 0 : i32
    return %c0_i32, %arg0 : i32, i32
  }
  func.func @transform_2(%arg0: i32) -> (i32, i32) {
    %c0_i32 = arith.constant 0 : i32
    %c0_i32_0 = arith.constant 0 : i32
    return %c0_i32, %arg0 : i32, i32
  }
  func.func @transform_3(%arg0: i32) -> (i32, i32) {
    %c0_i32 = arith.constant 0 : i32
    %c0_i32_0 = arith.constant 0 : i32
    return %c0_i32, %arg0 : i32, i32
  }
  func.func @transform_4(%arg0: i32) -> (i32, i32) {
    %c0_i32 = arith.constant 0 : i32
    %c0_i32_0 = arith.constant 0 : i32
    return %c0_i32, %arg0 : i32, i32
  }
  func.func @transform_5(%arg0: i32) -> (i32, i32) {
    %c0_i32 = arith.constant 0 : i32
    %c0_i32_0 = arith.constant 0 : i32
    return %c0_i32, %arg0 : i32, i32
  }
  func.func @transform_6(%arg0: i32) -> (i32, i32) {
    %c0_i32 = arith.constant 0 : i32
    %c0_i32_0 = arith.constant 0 : i32
    return %c0_i32, %arg0 : i32, i32
  }
  func.func @transform_7(%arg0: i32) -> (i32, i32) {
    %c0_i32 = arith.constant 0 : i32
    %c0_i32_0 = arith.constant 0 : i32
    return %c0_i32, %arg0 : i32, i32
  }
}

</mosaic_0001>

<bundles_post_ra>
// kernel: tpu_custom_call.1
= control target key start
LH: loop header
LB: loop body
LE: loop exit
PB: predicated region body
PF: predicated region fallthrough
CT: control target
= control target key end

     0   :  { %13 = vsyncpa [#allocation3], 0  ;;  %s509_s0 = inlined_call_operand.hbm [shape: f32[8,32], index: 0, kind: input, shape index: {}]   ;;  %s510_s1 = inlined_call_operand.vmem [shape: f32[1,32], index: 1, kind: input, shape index: {}]   ;;  %s511_s2 = inlined_call_operand.vmem [shape: f32[1,32], index: 2, kind: input, shape index: {}]   ;;  %s512_s3 = inlined_call_operand.vmem [shape: f32[1,32], index: 3, kind: input, shape index: {}]   ;;  %s513_s4 = inlined_call_operand.vmem [shape: f32[1,32], index: 4, kind: input, shape index: {}]   ;;  %s514_s5 = inlined_call_operand.hbm [shape: f32[8,32], index: 5, kind: output, shape index: {0}]   ;;  %s515_s6 = inlined_call_operand.hbm [shape: f32[1,32], index: 6, kind: output, shape index: {1}]   ;;  %s516_s7 = inlined_call_operand.hbm [shape: f32[1,32], index: 7, kind: output, shape index: {2}]  }
   0x1   :  { %14 = vsyncpa [#allocation4], 0 }
   0x2   :  { %15 = vsyncpa [#allocation7], 0  ;;  %s389_s24 = smov [#allocation2]   ;;  %s295_s28 = scalar_lea.hbm %s509_s0, 128 }
   0x3   :  { %s22_s25 = sshll.u32 %s389_s24, 4  ;;  %p296_p0 = scmp.ne.s32.totalorder %s509_s0, %s295_s28  ;;  %s23_s25 = int_to_ptr.vmem [resolvable:$true] %s22_s25 }
   0x4   :  { %p299_p1 = scmp.lt.u32.totalorder %s295_s28, %s509_s0 }
   0x6   :  { %p301_p2 = pnand %p299_p1, %p296_p0 }
   0x8   :  { %304 = shalt.err (!%p301_p2)
}
   0x9   :  { %s305_s10 = scalar_lea.vmem %s23_s25, 128  ;;  %p310_p4 = scmp.lt.s32.totalorder %s23_s25, %s23_s25 }
   0xa   :  { %p306_p3 = scmp.ne.s32.totalorder %s23_s25, %s305_s10  ;;  %p311_p5 = scmp.lt.s32.totalorder %s305_s10, %s305_s10 }
   0xc   :  { %p312_p6 = por %p311_p5, %p310_p4 }
   0xe   :  { %p313_p7 = pnand %p312_p6, %p306_p3 }
  0x10   :  { %316 = shalt.err (!%p313_p7)
}
  0x11   :  { %25 = dma.hbm_to_vmem [thread:$0]  %s509_s0, 128, %s23_s25, [#allocation3]  }
  0x12   :  { %383 = dma.done.wait [#allocation3], 128  }
  0x13   :  { %384 = vsyncadd [#allocation3], 4294967168  ;;  %v38_v0 = vlaneseq  ;;  %v390_v1 = vmov 0.0   ;;  %vm391_vm0 = vmmov 0   ;;  %v37_v4 = vld [vmem:[#allocation2] sm:$0xff]  ;;  %vm43_vm1 = vcmask 64512  }
  0x14   :  { %276 = vmatprep.subr.mxu0 %v390_v1  ;;  %278 = vmatprep.mubr.msk.f32.mxu0 %vm391_vm0, %v390_v1  ;;  %v392_v8 = vmov 1.0   ;;  %v217_v10 = vld [vmem:[%s512_s3] sm:$0x1]  ;;  %s393_s16 = smov [#allocation6]   ;;  %vm222_vm2 = vcmask 253952   ;;  %s394_s3 = smov [#allocation8]  }
  0x15   :  { %v39_v2 = vshrl.u32 %v38_v0, 7  ;;  %281 = vmatprep.subr.mxu1 %v390_v1  ;;  %283 = vmatprep.mubr.msk.f32.mxu1 %vm391_vm0, %v390_v1  ;;  %v219_v18 = vmul.f32 0.9, %v217_v10  ;;  %v218_v19 = vld [vmem:[%s513_s4] sm:$0x1]  ;;  %s244_s17 = sshll.u32 %s393_s16, 4  ;;  %s245_s17 = int_to_ptr.vmem [resolvable:$true] %s244_s17 }
  0x16   :  { %v224_v23 = vmul.f32 0.9, %v218_v19  ;;  %s254_s18 = sshll.u32 %s394_s3, 4  ;;  %s317_s19 = scalar_lea.vmem %s245_s17, 16  ;;  %s255_s18 = int_to_ptr.vmem [resolvable:$true] %s254_s18 }
  0x17   :  { %v448_v3 = vsub.s32 0, %v39_v2  ;;  %p318_p8 = scmp.ne.s32.totalorder %s245_s17, %s317_s19  ;;  %s321_s20 = scalar_lea.vmem %s245_s17, 32 }
  0x18   :  { %p322_p9 = scmp.lt.s32.totalorder %s245_s17, %s245_s17  ;;  %p323_p10 = scmp.lt.s32.totalorder %s321_s20, %s317_s19 }
  0x19   :  { %v41_v5 = vrot.slane %v37_v4, %v448_v3 }
  0x1a   :  { %p324_p11 = por %p323_p10, %p322_p9 }
  0x1b   :  { %v451_v6 = vsub.f32 %v37_v4, %v41_v5 }
  0x1c   :  { %p325_p12 = pnand %p324_p11, %p318_p8 }
  0x1d   :  { %277 = vmatpush3.msra.mxu0 %v451_v6  ;;  %v117_v7 = vmul.f32 %v451_v6, %v451_v6 }
  0x1e   :  { %279 = vmatmul.mubr.msk.f32.vlgmr.msra.gmra.mrb[0].mxu0 %vm43_vm1, %v392_v8 }
  0x1f   :  { %282 = vmatpush3.msra.mxu1 %v117_v7 }
  0x20   :  { %284 = vmatmul.mubr.msk.f32.vlgmr.msra.gmra.mrb[0].mxu1 %vm43_vm1, %v392_v8 }
  0xf1   :  { %v113_v9 = vpop.f32.mrb[0].mxu0 }
  0xf2   :  { %v188_v11 = vmul.f32 0.125, %v113_v9  ;;  %v280_v12 = vpop.f32.mrb[1].mxu0 }
  0xf3   :  { %v184_v13 = vpop.f32.mrb[0].mxu1 }
  0xf4   :  { %v193_v14 = vadd.f32 %v188_v11, %v37_v4  ;;  %v189_v15 = vmul.f32 0.125, %v184_v13  ;;  %v190_v16 = vmul.f32 %v188_v11, %v188_v11  ;;  %v285_v17 = vpop.f32.mrb[1].mxu1 }
  0xf6   :  { %v220_v20 = vmul.f32 0.1, %v193_v14  ;;  %v191_v21 = vsub.f32 %v189_v15, %v190_v16 }
  0xf8   :  { %v192_v22 = vmax.f32 %v191_v21, 0.0  ;;  %v221_v24 = vadd.f32 %v220_v20, %v219_v18 }
  0xfa   :  { %v194_v25 = vadd.f32 1e-05, %v192_v22  ;;  %v225_v26 = vmul.f32 0.1, %v192_v22  ;;  %223 = vst.msk [vmem:[#allocation6] sm:$0x1] %vm222_vm2, %v221_v24 }
  0xfb   :  { %328 = shalt.err (!%p325_p12)
}
  0xfc   :  { %s329_s22 = scalar_lea.hbm %s515_s6, 16 }
  0xfd   :  { %p330_p13 = scmp.ne.s32.totalorder %s515_s6, %s329_s22  ;;  %p333_p0 = scmp.lt.u32.totalorder %s329_s22, %s515_s6 }
  0xff   :  { %p335_p1 = pnand %p333_p0, %p330_p13 }
 0x101   :  { %338 = shalt.err (!%p335_p1)
}
 0x102   :  { %247 = dma.vmem_to_hbm [thread:$0]  %s245_s17, 16, %s515_s6, [#allocation7]   ;;  %293 = vrsqrt.f32 %v194_v25  ;;  %v226_v27 = vadd.f32 %v225_v26, %v224_v23 }
 0x103   :  { %s339_s29 = scalar_lea.vmem %s255_s18, 16  ;;  %s343_s30 = scalar_lea.vmem %s255_s18, 32 }
 0x104   :  { %227 = vst.msk [vmem:[#allocation8] sm:$0x1] %vm222_vm2, %v226_v27  ;;  %p340_p2 = scmp.ne.s32.totalorder %s255_s18, %s339_s29  ;;  %p344_p3 = scmp.lt.s32.totalorder %s255_s18, %s255_s18 }
 0x105   :  { %p345_p4 = scmp.lt.s32.totalorder %s343_s30, %s339_s29 }
 0x107   :  { %p346_p5 = por %p345_p4, %p344_p3 }
 0x109   :  { %p347_p6 = pnand %p346_p5, %p340_p2 }
 0x10b   :  { %350 = shalt.err (!%p347_p6)
}
 0x10c   :  { %s351_s10 = scalar_lea.hbm %s516_s7, 16 }
 0x10d   :  { %p352_p7 = scmp.ne.s32.totalorder %s516_s7, %s351_s10  ;;  %p355_p8 = scmp.lt.u32.totalorder %s351_s10, %s516_s7 }
 0x10f   :  { %p357_p9 = pnand %p355_p8, %p352_p7 }
 0x111   :  { %360 = shalt.err (!%p357_p9)
}
 0x112   :  { %257 = dma.vmem_to_hbm [thread:$0]  %s255_s18, 16, %s516_s7, [#allocation7]   ;;  %v196_v28 = vld [vmem:[%s510_s1] sm:$0x1]  ;;  %v294_v29 = vpop.eup %293  ;;  %vm215_vm3 = vcmask 261120  }
 0x113   :  { %v198_v30 = vmul.f32 %v294_v29, %v196_v28  ;;  %v197_v31 = vld [vmem:[%s511_s2] sm:$0x1]  ;;  %s395_s19 = smov [#allocation5]  }
 0x114   :  { %s234_s20 = sshll.u32 %s395_s19, 4  ;;  %s235_s20 = int_to_ptr.vmem [resolvable:$true] %s234_s20 }
 0x115   :  { %v199_v32 = vmul.f32 %v198_v30, %v188_v11  ;;  %v205_v33 = vrot.slane %v198_v30, %v448_v3  ;;  %s361_s1 = scalar_lea.vmem %s235_s20, 128  ;;  %p366_p11 = scmp.lt.s32.totalorder %s235_s20, %s235_s20 }
 0x116   :  { %p362_p10 = scmp.ne.s32.totalorder %s235_s20, %s361_s1  ;;  %p367_p12 = scmp.lt.s32.totalorder %s361_s1, %s361_s1 }
 0x117   :  { %v200_v34 = vsub.f32 %v197_v31, %v199_v32  ;;  %v207_v35 = vmul.f32 %v205_v33, %v451_v6 }
 0x118   :  { %p368_p13 = por %p367_p12, %p366_p11 }
 0x119   :  { %v212_v36 = vrot.slane %v200_v34, %v448_v3 }
 0x11a   :  { %p369_p0 = pnand %p368_p13, %p362_p10 }
 0x11b   :  { %v214_v37 = vadd.f32 %v212_v36, %v207_v35 }
 0x11d   :  { %216 = vst.msk [vmem:[#allocation5] sm:$0xff] %vm215_vm3, %v214_v37 }
 0x11e   :  { %372 = shalt.err (!%p369_p0)
}
 0x11f   :  { %s373_s18 = scalar_lea.hbm %s514_s5, 128 }
 0x120   :  { %p374_p1 = scmp.ne.s32.totalorder %s514_s5, %s373_s18  ;;  %p377_p2 = scmp.lt.u32.totalorder %s373_s18, %s514_s5 }
 0x122   :  { %p379_p3 = pnand %p377_p2, %p374_p1 }
 0x124   :  { %382 = shalt.err (!%p379_p3)
}
 0x125   :  { %237 = dma.vmem_to_hbm [thread:$0]  %s235_s20, 128, %s514_s5, [#allocation4]  }
 0x126   :  { %385 = dma.done.wait [#allocation4], 128  }
 0x127   :  { %386 = vsyncadd [#allocation4], 4294967168 }
 0x128   :  { %387 = dma.done.wait [#allocation7], 32  }
 0x129   :  { %388 = vsyncadd [#allocation7], 4294967264 }
 0x12a   :  { %267 = vsyncpa [#allocation3], 1 }
 0x12b   :  { %268 = vsyncpa [#allocation4], 1 }
 0x12c   :  { %269 = vsyncpa [#allocation7], 1 }

</bundles_post_ra>
